<compile_context>
chip_gen: v5e
topology: v5e:2x2
jax: 0.10.0
libtpu: 0.0.40
codegen_flags: <defaults>
</compile_context>

<pallas_src>
import jax
import jax.numpy as jnp
from jax.experimental import pallas as pl
from jax.experimental.pallas import tpu as pltpu


def _conv1x1_kernel(w_ref, b_ref, x_ref, o_ref):
    # w_ref: (Cout, Cin) in SMEM, b_ref: (Cout,) in SMEM
    # x_ref: (Cin, TP)  VMEM tile, pixel axis lane-dense
    # o_ref: (Cout, TP) VMEM tile, pixel axis lane-dense
    cout, cin = w_ref.shape
    # Load each input-channel row once; reuse across all output channels.
    xs = [x_ref[pl.ds(ci, 1), :] for ci in range(cin)]  # each (1, TP) f32
    for co in range(cout):
        acc = xs[0] * w_ref[co, 0]
        for ci in range(1, cin):
            acc = acc + xs[ci] * w_ref[co, ci]
        o_ref[pl.ds(co, 1), :] = acc + b_ref[co]


def conv1x1_pallas(x_nchw, weight, bias, *, max_tp=131072):
    """1x1 Conv2d forward matching torch.nn.Conv2d(kernel_size=1, padding=0).

    x_nchw: (N, Cin, H, W) float32
    weight: (Cout, Cin, 1, 1) float32   (PyTorch layout)
    bias:   (Cout,) float32
    returns (N, Cout, H, W) float32
    """
    N, Cin, H, W = x_nchw.shape
    Cout = weight.shape[0]
    P = H * W

    # Pixel tile: multiple of 128 lanes, capped so the 2x-buffered working set
    # (in + out blocks, 3 channels each, f32) stays a few MiB — safe on v5e/v6e
    # and on v7x's smaller 64 MiB VMEM.
    tp = min(pl.cdiv(P, 128) * 128, max_tp)
    p_pad = pl.cdiv(P, tp) * tp

    # Free reshape on contiguous NCHW; no transposes.
    x3 = x_nchw.reshape(N, Cin, P).astype(jnp.float32)
    if p_pad != P:
        # Pad only the pixel (lane) axis of the last tile.
        x3 = jnp.pad(x3, ((0, 0), (0, 0), (0, p_pad - P)))

    w2 = weight[:, :, 0, 0].astype(jnp.float32)  # (Cout, Cin) — 9 scalars
    b1 = bias.astype(jnp.float32)                # (Cout,)     — 3 scalars

    grid = (N, p_pad // tp)

    cost = pl.CostEstimate(
        flops=2 * N * P * Cin * Cout,
        transcendentals=0,
        bytes_accessed=4 * N * P * (Cin + Cout) + 4 * (Cout * Cin + Cout),
    )

    out3 = pl.pallas_call(
        _conv1x1_kernel,
        out_shape=jax.ShapeDtypeStruct((N, Cout, p_pad), jnp.float32),
        grid=grid,
        in_specs=[
            pl.BlockSpec(memory_space=pltpu.MemorySpace.SMEM),          # weights
            pl.BlockSpec(memory_space=pltpu.MemorySpace.SMEM),          # bias
            pl.BlockSpec((None, Cin, tp), lambda n, p: (n, 0, p)),      # x tile
        ],
        out_specs=pl.BlockSpec((None, Cout, tp), lambda n, p: (n, 0, p)),
        compiler_params=pltpu.CompilerParams(
            dimension_semantics=("parallel", "parallel")),
        cost_estimate=cost,
    )(w2, b1, x3)

    if p_pad != P:
        out3 = out3[:, :, :P]
    return out3.reshape(N, Cout, H, W)


if __name__ == "__main__":
    key = jax.random.PRNGKey(0)
    k_x, k_w, k_b = jax.random.split(key, 3)

    in_channels, out_channels = 3, 3
    N, H, W = 2, 16, 16

    x = jax.random.normal(k_x, (N, in_channels, H, W), dtype=jnp.float32)

    # Deterministic parameter init mimicking PyTorch Conv2d default
    # (uniform in +/- 1/sqrt(fan_in), fan_in = in_channels * 1 * 1).
    bound = 1.0 / (in_channels ** 0.5)
    weight = jax.random.uniform(
        k_w, (out_channels, in_channels, 1, 1), jnp.float32, -bound, bound)
    bias = jax.random.uniform(
        k_b, (out_channels,), jnp.float32, -bound, bound)

    y = conv1x1_pallas(x, weight, bias)
    y = jax.block_until_ready(y)

    # Sanity check against a plain-JAX reference of the same math.
    ref = jnp.einsum("nchw,oc->nohw", x, weight[:, :, 0, 0]) + bias[None, :, None, None]
    assert y.shape == (N, out_channels, H, W)
    assert jnp.allclose(y, ref, atol=1e-5, rtol=1e-5)

    print("KERNEL_OK")
</pallas_src>

<mosaic_0001>
module attributes {stable_mosaic.version = 11 : i64} {
  func.func @_conv1x1_kernel(%arg0: i32, %arg1: i32, %arg2: memref<3x3xf32, #tpu.memory_space<smem>>, %arg3: memref<3xf32, #tpu.memory_space<smem>>, %arg4: memref<1x3x256xf32, #tpu.memory_space<vmem>>, %arg5: memref<1x3x256xf32, #tpu.memory_space<vmem>>) attributes {dimension_semantics = [#tpu.dimension_semantics<parallel>, #tpu.dimension_semantics<parallel>], iteration_bounds = array<i64: 2, 1>, scalar_prefetch = 0 : i64, scratch_operands = 0 : i64, tpu.core_type = #tpu.core_type<tc>, window_params = [{transform_indices = @transform_0, window_bounds = array<i64: 3, 3>}, {transform_indices = @transform_1, window_bounds = array<i64: 3>}, {transform_indices = @transform_2, window_bounds = array<i64: 1, 3, 256>}, {transform_indices = @transform_3, window_bounds = array<i64: 1, 3, 256>}]} {
    %c0 = arith.constant 0 : index
    %c0_0 = arith.constant 0 : index
    %c0_1 = arith.constant 0 : index
    %0 = vector.load %arg4[%c0, %c0_0, %c0_1] : memref<1x3x256xf32, #tpu.memory_space<vmem>>, vector<1x1x256xf32>
    %1 = vector.shape_cast %0 : vector<1x1x256xf32> to vector<1x256xf32>
    %c0_2 = arith.constant 0 : index
    %c1 = arith.constant 1 : index
    %c0_3 = arith.constant 0 : index
    %2 = vector.load %arg4[%c0_2, %c1, %c0_3] : memref<1x3x256xf32, #tpu.memory_space<vmem>>, vector<1x1x256xf32>
    %3 = vector.shape_cast %2 : vector<1x1x256xf32> to vector<1x256xf32>
    %c0_4 = arith.constant 0 : index
    %c2 = arith.constant 2 : index
    %c0_5 = arith.constant 0 : index
    %4 = vector.load %arg4[%c0_4, %c2, %c0_5] : memref<1x3x256xf32, #tpu.memory_space<vmem>>, vector<1x1x256xf32>
    %5 = vector.shape_cast %4 : vector<1x1x256xf32> to vector<1x256xf32>
    %c0_6 = arith.constant 0 : index
    %c0_7 = arith.constant 0 : index
    %6 = memref.load %arg2[%c0_6, %c0_7] : memref<3x3xf32, #tpu.memory_space<smem>>
    %7 = vector.broadcast %6 : f32 to vector<1x256xf32>
    %8 = arith.mulf %1, %7 : vector<1x256xf32>
    %c0_8 = arith.constant 0 : index
    %c1_9 = arith.constant 1 : index
    %9 = memref.load %arg2[%c0_8, %c1_9] : memref<3x3xf32, #tpu.memory_space<smem>>
    %10 = vector.broadcast %9 : f32 to vector<1x256xf32>
    %11 = arith.mulf %3, %10 : vector<1x256xf32>
    %12 = arith.addf %8, %11 : vector<1x256xf32>
    %c0_10 = arith.constant 0 : index
    %c2_11 = arith.constant 2 : index
    %13 = memref.load %arg2[%c0_10, %c2_11] : memref<3x3xf32, #tpu.memory_space<smem>>
    %14 = vector.broadcast %13 : f32 to vector<1x256xf32>
    %15 = arith.mulf %5, %14 : vector<1x256xf32>
    %16 = arith.addf %12, %15 : vector<1x256xf32>
    %c0_12 = arith.constant 0 : index
    %17 = memref.load %arg3[%c0_12] : memref<3xf32, #tpu.memory_space<smem>>
    %18 = vector.broadcast %17 : f32 to vector<1x256xf32>
    %19 = arith.addf %16, %18 : vector<1x256xf32>
    %c0_13 = arith.constant 0 : index
    %c0_14 = arith.constant 0 : index
    %c0_15 = arith.constant 0 : index
    %20 = vector.load %arg5[%c0_13, %c0_14, %c0_15] : memref<1x3x256xf32, #tpu.memory_space<vmem>>, vector<1x1x256xf32>
    %21 = vector.shape_cast %20 : vector<1x1x256xf32> to vector<1x256xf32>
    %22 = vector.shape_cast %19 : vector<1x256xf32> to vector<1x1x256xf32>
    tpu.vector_store %arg5[%c0_13, %c0_14, %c0_15], %22 {strides = array<i32>} : memref<1x3x256xf32, #tpu.memory_space<vmem>>, vector<1x1x256xf32>,
    %c1_16 = arith.constant 1 : index
    %c0_17 = arith.constant 0 : index
    %23 = memref.load %arg2[%c1_16, %c0_17] : memref<3x3xf32, #tpu.memory_space<smem>>
    %24 = vector.broadcast %23 : f32 to vector<1x256xf32>
    %25 = arith.mulf %1, %24 : vector<1x256xf32>
    %c1_18 = arith.constant 1 : index
    %c1_19 = arith.constant 1 : index
    %26 = memref.load %arg2[%c1_18, %c1_19] : memref<3x3xf32, #tpu.memory_space<smem>>
    %27 = vector.broadcast %26 : f32 to vector<1x256xf32>
    %28 = arith.mulf %3, %27 : vector<1x256xf32>
    %29 = arith.addf %25, %28 : vector<1x256xf32>
    %c1_20 = arith.constant 1 : index
    %c2_21 = arith.constant 2 : index
    %30 = memref.load %arg2[%c1_20, %c2_21] : memref<3x3xf32, #tpu.memory_space<smem>>
    %31 = vector.broadcast %30 : f32 to vector<1x256xf32>
    %32 = arith.mulf %5, %31 : vector<1x256xf32>
    %33 = arith.addf %29, %32 : vector<1x256xf32>
    %c1_22 = arith.constant 1 : index
    %34 = memref.load %arg3[%c1_22] : memref<3xf32, #tpu.memory_space<smem>>
    %35 = vector.broadcast %34 : f32 to vector<1x256xf32>
    %36 = arith.addf %33, %35 : vector<1x256xf32>
    %c0_23 = arith.constant 0 : index
    %c1_24 = arith.constant 1 : index
    %c0_25 = arith.constant 0 : index
    %37 = vector.load %arg5[%c0_23, %c1_24, %c0_25] : memref<1x3x256xf32, #tpu.memory_space<vmem>>, vector<1x1x256xf32>
    %38 = vector.shape_cast %37 : vector<1x1x256xf32> to vector<1x256xf32>
    %39 = vector.shape_cast %36 : vector<1x256xf32> to vector<1x1x256xf32>
    tpu.vector_store %arg5[%c0_23, %c1_24, %c0_25], %39 {strides = array<i32>} : memref<1x3x256xf32, #tpu.memory_space<vmem>>, vector<1x1x256xf32>,
    %c2_26 = arith.constant 2 : index
    %c0_27 = arith.constant 0 : index
    %40 = memref.load %arg2[%c2_26, %c0_27] : memref<3x3xf32, #tpu.memory_space<smem>>
    %41 = vector.broadcast %40 : f32 to vector<1x256xf32>
    %42 = arith.mulf %1, %41 : vector<1x256xf32>
    %c2_28 = arith.constant 2 : index
    %c1_29 = arith.constant 1 : index
    %43 = memref.load %arg2[%c2_28, %c1_29] : memref<3x3xf32, #tpu.memory_space<smem>>
    %44 = vector.broadcast %43 : f32 to vector<1x256xf32>
    %45 = arith.mulf %3, %44 : vector<1x256xf32>
    %46 = arith.addf %42, %45 : vector<1x256xf32>
    %c2_30 = arith.constant 2 : index
    %c2_31 = arith.constant 2 : index
    %47 = memref.load %arg2[%c2_30, %c2_31] : memref<3x3xf32, #tpu.memory_space<smem>>
    %48 = vector.broadcast %47 : f32 to vector<1x256xf32>
    %49 = arith.mulf %5, %48 : vector<1x256xf32>
    %50 = arith.addf %46, %49 : vector<1x256xf32>
    %c2_32 = arith.constant 2 : index
    %51 = memref.load %arg3[%c2_32] : memref<3xf32, #tpu.memory_space<smem>>
    %52 = vector.broadcast %51 : f32 to vector<1x256xf32>
    %53 = arith.addf %50, %52 : vector<1x256xf32>
    %c0_33 = arith.constant 0 : index
    %c2_34 = arith.constant 2 : index
    %c0_35 = arith.constant 0 : index
    %54 = vector.load %arg5[%c0_33, %c2_34, %c0_35] : memref<1x3x256xf32, #tpu.memory_space<vmem>>, vector<1x1x256xf32>
    %55 = vector.shape_cast %54 : vector<1x1x256xf32> to vector<1x256xf32>
    %56 = vector.shape_cast %53 : vector<1x256xf32> to vector<1x1x256xf32>
    tpu.vector_store %arg5[%c0_33, %c2_34, %c0_35], %56 {strides = array<i32>} : memref<1x3x256xf32, #tpu.memory_space<vmem>>, vector<1x1x256xf32>,
    return
  }
  func.func @transform_0(%arg0: i32, %arg1: i32) -> (i32, i32) {
    %c0_i32 = arith.constant 0 : i32
    %c0_i32_0 = arith.constant 0 : i32
    %c0_i32_1 = arith.constant 0 : i32
    return %c0_i32, %c0_i32_0 : i32, i32
  }
  func.func @transform_1(%arg0: i32, %arg1: i32) -> i32 {
    %c0_i32 = arith.constant 0 : i32
    %c0_i32_0 = arith.constant 0 : i32
    return %c0_i32 : i32
  }
  func.func @transform_2(%arg0: i32, %arg1: i32) -> (i32, i32, i32) {
    %c0_i32 = arith.constant 0 : i32
    %c0_i32_0 = arith.constant 0 : i32
    return %arg0, %c0_i32, %arg1 : i32, i32, i32
  }
  func.func @transform_3(%arg0: i32, %arg1: i32) -> (i32, i32, i32) {
    %c0_i32 = arith.constant 0 : i32
    %c0_i32_0 = arith.constant 0 : i32
    return %arg0, %c0_i32, %arg1 : i32, i32, i32
  }
}

</mosaic_0001>

<bundles_post_ra>
// kernel: tpu_custom_call.1
= control target key start
LH: loop header
LB: loop body
LE: loop exit
PB: predicated region body
PF: predicated region fallthrough
CT: control target
= control target key end

     0   :  { %8 = vsyncpa [#allocation3], 0  ;;  %s630_s0 = inlined_call_operand.vmem [shape: f32[3,3], index: 0, kind: input, shape index: {}]   ;;  %s631_s1 = inlined_call_operand.vmem [shape: f32[3], index: 1, kind: input, shape index: {}]   ;;  %s632_s2 = inlined_call_operand.vmem [shape: f32[2,3,256], index: 2, kind: input, shape index: {}]   ;;  %s633_s3 = inlined_call_operand.vmem [shape: f32[2,3,256], index: 3, kind: output, shape index: {}]  }
   0x1   :  { %9 = vsyncpa [#allocation5], 0  ;;  %s562_s12 = smov 0   ;;  %s564_s13 = smov 0  }
   0x2   :  { %s566_s14 = smov 0  }
   0x3 LB: > { %s402_s15 = sadd.s32 4294967295, %s538_s14   ;;  %s27_s16 = sadd.s32 1, %s534_s13  ;;  %s538_s14 = sphi %s566_s14, %s15_s14   ;;  %s534_s13 = sphi %s564_s13, %s638_s13   ;;  %s530_s12 = sphi %s562_s12, %s637_s12  }
   0x4   : > { %p29_p0 = scmp.ge.s32.totalorder %s27_s16, 2  ;;  %p404_p1 = scmp.ge.s32.totalorder %s538_s14, 1 }
   0x5   : > { %p130_p2 = scmp.lt.s32.totalorder %s538_s14, 3  ;;  %p583_p4 = scmp.eq.s32.totalorder %s402_s15, 0 }
   0x6   : > { %s640_s16 = smov (%p29_p0, %s27_s16), 0  ;;  %s142_s20 = sshll.u32 %s630_s0, 4  ;;  %s143_s20 = int_to_ptr.vmem [resolvable:$true] %s142_s20 }
   0x7   : > { %p131_p3 = pnand %p404_p1, %p130_p2  ;;  %s152_s23 = sshll.u32 %s631_s1, 4  ;;  %s153_s23 = int_to_ptr.vmem [resolvable:$true] %s152_s23 }
   0x8   : > { %s540_s24 = smov [#allocation2]   ;;  %s541_s25 = smov [#allocation4]  }
   0x9   : > { %p441_p5 = pneg %p131_p3 }
   0xa   : > { %178 = sbr.rel (%p131_p3) target bundleno = 45 (0x2d), region = 32 }
   0xb   : > { %p442_p6 = pnand %p583_p4, %p441_p5 }
   0xd   : > { %444 = dma.vmem_to_smem (!%p442_p6), %s143_s20, 64, %s540_s24, [#allocation3]  }
   0xe   : > { %447 = dma.vmem_to_smem (!%p442_p6), %s153_s23, 16, %s541_s25, [#allocation5]  }
   0xf   : > { %521 = dma.done.wait (%p583_p4), [#allocation3], 64  }
  0x10   : > { %523 = vsyncadd (%p583_p4), [#allocation3], 4294967232 }
  0x11   : > { %525 = dma.done.wait (%p583_p4), [#allocation5], 16  }
  0x12   : > { %527 = vsyncadd (%p583_p4), [#allocation5], 4294967280 }
  0x13   : > { %190 = sfence }
  0x14   : > { %p218_p7 = scmp.lt.s32.totalorder %s530_s12, 1  ;;  %s242_s26 = sld [smem:[#allocation2]]  ;;  %v256_v8 = vlaneseq }
  0x15   : > { %s417_s27 = sld [smem:[#allocation2 + $0x1]] }
  0x16   : > { %s642_s12 = smov (!%p218_p7, %s530_s12), 1  ;;  %s418_s28 = sld [smem:[#allocation2 + $0x2]]  ;;  %vm611_vm0 = vcmp.lt.s32.totalorder %v256_v8, 256 }
  0x17   : > { %s431_s29 = sshll.u32 %s642_s12, 3  ;;  %s253_s30 = sld [smem:[#allocation4]] }
  0x18   : > { %s225_s6 = scalar_lea.vmem %s632_s2, %s431_s29  ;;  %s419_s7 = sld [smem:[#allocation2 + $0x80]] }
  0x19   : > { %v237_v0 = vld [vmem:[%s225_s6] ss:$4 sm:$0x3]  ;;  %v415_v1 = vld [vmem:[%s225_s6 + $0x1] ss:$4 sm:$0x3]  ;;  %s235_s18 = scalar_lea.vmem %s633_s3, %s431_s29 }
  0x1a   : > { %v243_v2 = vstv %s242_s26  ;;  %v416_v3 = vld [vmem:[%s225_s6 + $0x2] ss:$4 sm:$0x3]  ;;  %s420_s8 = sld [smem:[#allocation2 + $0x81]] }
  0x1b   : > { %v244_v4 = vmul.f32 %v243_v2, %v237_v0  ;;  %v246_v5 = vstv %s417_s27  ;;  %s424_s9 = sld [smem:[#allocation2 + $0x100]] }
  0x1c   : > { %v247_v6 = vmul.f32 %v415_v1, %v246_v5  ;;  %v250_v7 = vstv %s418_s28  ;;  %s425_s10 = sld [smem:[#allocation2 + $0x101]] }
  0x1d   : > { %v251_v10 = vmul.f32 %v416_v3, %v250_v7  ;;  %v254_v11 = vstv %s253_s30  ;;  %s421_s11 = sld [smem:[#allocation2 + $0x82]] }
  0x1e   : > { %v248_v9 = vadd.f32 %v247_v6, %v244_v4  ;;  %s422_s12 = sld [smem:[#allocation4 + $0x1]]  ;;  %v262_v14 = vstv %s419_s7 }
  0x1f   : > { %s426_s19 = sld [smem:[#allocation2 + $0x102]]  ;;  %v263_v16 = vmul.f32 %v262_v14, %v237_v0 }
  0x20   : > { %v252_v12 = vadd.f32 %v251_v10, %v248_v9  ;;  %v265_v17 = vstv %s420_s8  ;;  %s427_s20 = sld [smem:[#allocation4 + $0x2]] }
  0x21   : > { %v266_v18 = vmul.f32 %v415_v1, %v265_v17  ;;  %v278_v19 = vstv %s424_s9 }
  0x22   : > { %v255_v15 = vadd.f32 %v254_v11, %v252_v12  ;;  %v279_v20 = vmul.f32 %v278_v19, %v237_v0  ;;  %v281_v21 = vstv %s425_s10 }
  0x23   : > { %v282_v22 = vmul.f32 %v415_v1, %v281_v21  ;;  %v267_v23 = vadd.f32 %v266_v18, %v263_v16  ;;  %v269_v24 = vstv %s421_s11 }
  0x24   : > { %260 = vst.msk [vmem:[%s235_s18] ss:$4 sm:$0x3] %vm611_vm0, %v255_v15  ;;  %v270_v25 = vmul.f32 %v416_v3, %v269_v24  ;;  %v273_v26 = vstv %s422_s12 }
  0x25   : > { %v283_v27 = vadd.f32 %v282_v22, %v279_v20  ;;  %v285_v28 = vstv %s426_s19 }
  0x26   : > { %v271_v29 = vadd.f32 %v270_v25, %v267_v23  ;;  %v286_v30 = vmul.f32 %v416_v3, %v285_v28  ;;  %v289_v31 = vstv %s427_s20 }
  0x28   : > { %v274_v32 = vadd.f32 %v273_v26, %v271_v29  ;;  %v287_v33 = vadd.f32 %v286_v30, %v283_v27 }
  0x2a   : > { %423 = vst.msk [vmem:[%s235_s18 + $0x1] ss:$4 sm:$0x3] %vm611_vm0, %v274_v32  ;;  %v290_v34 = vadd.f32 %v289_v31, %v287_v33 }
  0x2c   : > { %428 = vst.msk [vmem:[%s235_s18 + $0x2] ss:$4 sm:$0x3] %vm611_vm0, %v290_v34 }
  0x2d PF: > { %s15_s14 = sadd.s32 1, %s538_s14   ;;  %s637_s12 = smov %s534_s13 }
  0x2e   : > { %p12_p8 = scmp.ge.s32.totalorder %s15_s14, 4   ;;  %s638_s13 = smov %s640_s16 }
  0x30   :  { %14 = sbr.rel (!%p12_p8) target bundleno = 3 (0x3), region = 75 }
  0x35   :  { %323 = vsyncpa [#allocation3], 1 }
  0x36   :  { %325 = vsyncpa [#allocation3 + $0x1], 1 }
  0x37   :  { %326 = vsyncpa [#allocation5], 1 }

</bundles_post_ra>
